<compile_context>
chip_gen: v6e
topology: v6e:2x2x1
jax: 0.10.0
libtpu: 0.0.40
codegen_flags: <defaults>
</compile_context>

<pallas_src>
import functools

import jax
import jax.numpy as jnp
import numpy as np
from jax.experimental import pallas as pl
from jax.experimental.pallas import tpu as pltpu

LN_EPS = 1e-5
LANES = 128
SUBLANES = 8


def _round_up(n, m):
    return -(-n // m) * m


def _layernorm(x, gamma, beta):
    mu = jnp.mean(x, axis=-1, keepdims=True)
    var = jnp.mean((x - mu) ** 2, axis=-1, keepdims=True)
    return (x - mu) * jax.lax.rsqrt(var + LN_EPS) * gamma + beta


# -----------------------------------------------------------------------------
# Fused kernel: last-row attention + residual LayerNorm MLP + 3-layer MLP head.
# Single invocation (no grid); everything lives in VMEM.
# -----------------------------------------------------------------------------
def fused_attend_kernel(x_ref, data_ref, w_ref, b_ref, out_ref, *, dims, woff):
    D, H, M = dims["D"], dims["H"], dims["M"]
    F, HID, L = dims["F"], dims["HID"], dims["L"]

    x = x_ref[...]                                        # (B, S, D) f32
    B, S, _ = x.shape
    x_last = x[:, S - 1, :]                               # (B, D)

    # Zero-cost static views into the packed weight slab: every matrix starts at
    # lane 0 and at a sublane offset that is a multiple of 8 (no relayouts).
    def wview(name, rows, cols):
        off = woff[name]
        return w_ref[off:off + rows, 0:cols]

    wq = wview("wq", D, H)          # (D, H)
    wkT = wview("wkT", H, D)        # (H, D)  == Wk.T, transposed at pack time
    wv = wview("wv", D, H)          # (D, H)
    wc = wview("wc", H, D)          # (H, D)
    w1 = wview("w1", D, M)
    w2 = wview("w2", M, D)
    mw1d = wview("mw1d", F, HID)    # rows of model.Linear1 that multiply `data`
    mw1z = wview("mw1z", D, HID)    # rows of model.Linear1 that multiply `z`
    mw2 = wview("mw2", HID, HID)
    mw3 = wview("mw3", HID, L)

    g1 = b_ref[0:1, 0:D]
    be1 = b_ref[1:2, 0:D]
    g2 = b_ref[2:3, 0:D]
    be2 = b_ref[3:4, 0:D]
    b1 = b_ref[4:5, 0:M]
    b2 = b_ref[5:6, 0:D]
    mb1 = b_ref[6:7, 0:HID]
    mb2 = b_ref[7:8, 0:HID]
    mb3 = b_ref[8:9, 0:L]

    # ---- attention, last query row only (exact reassociation, no score scaling) ----
    q_last = jnp.dot(x_last, wq, preferred_element_type=jnp.float32)     # (B, H)
    qk = jnp.dot(q_last, wkT, preferred_element_type=jnp.float32)        # (B, D) = q_last @ Wk.T
    scores = jnp.sum(qk[:, None, :] * x, axis=-1)                        # (B, S) lane reduce
    scores = scores - jnp.max(scores, axis=-1, keepdims=True)
    e = jnp.exp(scores)
    alpha = e / jnp.sum(e, axis=-1, keepdims=True)                       # (B, S) exact divide
    xa = jnp.sum(alpha[:, :, None] * x, axis=1)                          # (B, D) sublane reduce
    av_last = jnp.dot(xa, wv, preferred_element_type=jnp.float32)        # (B, H) == (alpha @ V)[-1]
    u_prime = jnp.dot(av_last, wc, preferred_element_type=jnp.float32)   # (B, D)

    u = _layernorm(x_last + u_prime, g1, be1)                            # Norm1, (B, D)

    h1 = jnp.maximum(jnp.dot(u, w1, preferred_element_type=jnp.float32) + b1, 0.0)
    z_prime = jnp.dot(h1, w2, preferred_element_type=jnp.float32) + b2
    z = _layernorm(z_prime + u, g2, be2)                                 # Norm2, (B, D)

    # ---- MLP head over concat([data, z], dim=1) as a split matmul (no concat). ----
    # Dropout layers are inference-mode identities.
    data = data_ref[...]                                                 # (B, F)
    h = (jnp.dot(data, mw1d, preferred_element_type=jnp.float32)
         + jnp.dot(z, mw1z, preferred_element_type=jnp.float32) + mb1)
    h = jnp.maximum(h, 0.0)
    h = jnp.maximum(jnp.dot(h, mw2, preferred_element_type=jnp.float32) + mb2, 0.0)
    out = jnp.dot(h, mw3, preferred_element_type=jnp.float32) + mb3
    out_ref[...] = out.astype(out_ref.dtype)                             # (B, L)


# -----------------------------------------------------------------------------
# Host-side packing + wrapper.
# -----------------------------------------------------------------------------
_WEIGHT_ORDER = ("wq", "wkT", "wv", "wc", "w1", "w2", "mw1d", "mw1z", "mw2", "mw3")
_BIAS_ORDER = ("g1", "be1", "g2", "be2", "b1", "b2", "mb1", "mb2", "mb3")


def pack_params(p, dims):
    """One-time packing of the PyTorch-style parameters into two lane-padded f32
    slabs (weights + biases/LN) to minimise the kernel's DMA-descriptor count."""
    F = dims["F"]
    mats = {
        "wq": np.asarray(p["wq"], np.float32),
        "wkT": np.asarray(p["wk"], np.float32).T,           # pre-transposed K weights
        "wv": np.asarray(p["wv"], np.float32),
        "wc": np.asarray(p["wc"], np.float32),
        "w1": np.asarray(p["w1"], np.float32),
        "w2": np.asarray(p["w2"], np.float32),
        "mw1d": np.asarray(p["mw1"], np.float32)[:F, :],     # rows multiplying `data`
        "mw1z": np.asarray(p["mw1"], np.float32)[F:, :],     # rows multiplying `z`
        "mw2": np.asarray(p["mw2"], np.float32),
        "mw3": np.asarray(p["mw3"], np.float32),
    }
    # TODO(synk): this single-slab packing assumes every out_features <= 128 lanes;
    # the full-size module (hidden_dim=256, data_dim=2048) needs multi-column-block
    # packing (or per-matrix inputs) plus a batch grid.
    assert all(m.shape[1] <= LANES for m in mats.values())

    woff, row = {}, 0
    for name in _WEIGHT_ORDER:
        woff[name] = row
        row += _round_up(mats[name].shape[0], SUBLANES)
    wslab = np.zeros((_round_up(row, SUBLANES), LANES), np.float32)
    for name in _WEIGHT_ORDER:
        m = mats[name]
        wslab[woff[name]:woff[name] + m.shape[0], :m.shape[1]] = m

    bslab = np.zeros((_round_up(len(_BIAS_ORDER), SUBLANES), LANES), np.float32)
    for i, name in enumerate(_BIAS_ORDER):
        v = np.asarray(p[name], np.float32).reshape(-1)
        bslab[i, :v.shape[0]] = v

    return {"w": jnp.asarray(wslab), "b": jnp.asarray(bslab), "woff": woff}


def attend_approximator_forward(h_sequence, data, packed, dims):
    B = h_sequence.shape[0]
    kernel = functools.partial(fused_attend_kernel, dims=dims, woff=packed["woff"])
    vmem = pl.BlockSpec(memory_space=pltpu.MemorySpace.VMEM)
    return pl.pallas_call(
        kernel,
        out_shape=jax.ShapeDtypeStruct((B, dims["L"]), jnp.float32),
        in_specs=[vmem, vmem, vmem, vmem],
        out_specs=vmem,
    )(h_sequence, data, packed["w"], packed["b"])


# -----------------------------------------------------------------------------
# Pure-JAX reference (correctness check of packing / slicing / reassociation).
# -----------------------------------------------------------------------------
def reference_forward(h_sequence, data, p):
    with jax.default_matmul_precision("highest"):
        x = h_sequence
        q = x @ p["wq"]; k = x @ p["wk"]; v = x @ p["wv"]
        alpha = jax.nn.softmax(jnp.einsum("bqh,bkh->bqk", q, k), axis=2)
        u_prime = jnp.einsum("bqk,bkh->bqh", alpha, v) @ p["wc"]
        u = _layernorm(x + u_prime, p["g1"], p["be1"])
        z_prime = jnp.maximum(u @ p["w1"] + p["b1"], 0.0) @ p["w2"] + p["b2"]
        z = _layernorm(z_prime + u, p["g2"], p["be2"])[:, -1]
        xcat = jnp.concatenate([data, z], axis=1)
        h1 = jnp.maximum(xcat @ p["mw1"] + p["mb1"], 0.0)
        h2 = jnp.maximum(h1 @ p["mw2"] + p["mb2"], 0.0)
        return h2 @ p["mw3"] + p["mb3"]


if __name__ == "__main__":
    # Small shapes consistent with the module: arch_dim=16 -> h=8, m=64.
    B, S, D = 2, 8, 16
    H, M = D // 2, (D // 2) ** 2
    DATA_DIM, HIDDEN, LOGITS = 64, 32, 10   # dim_logits // 100 == 0 -> hidden-MLP head
    dims = {"D": D, "H": H, "M": M, "F": DATA_DIM, "HID": HIDDEN, "L": LOGITS}

    key = jax.random.PRNGKey(0)
    ks = jax.random.split(key, 16)

    def init(k, shape, scale=0.1):
        return jax.random.normal(k, shape, dtype=jnp.float32) * scale

    params = {
        "wq": init(ks[0], (D, H)), "wk": init(ks[1], (D, H)), "wv": init(ks[2], (D, H)),
        "wc": init(ks[3], (H, D)),
        "g1": jnp.ones((1, D), jnp.float32), "be1": jnp.zeros((1, D), jnp.float32),
        "w1": init(ks[4], (D, M)), "b1": init(ks[5], (1, M)),
        "w2": init(ks[6], (M, D)), "b2": init(ks[7], (1, D)),
        "g2": jnp.ones((1, D), jnp.float32), "be2": jnp.zeros((1, D), jnp.float32),
        "mw1": init(ks[8], (D + DATA_DIM, HIDDEN)), "mb1": init(ks[9], (1, HIDDEN)),
        "mw2": init(ks[10], (HIDDEN, HIDDEN)), "mb2": init(ks[11], (1, HIDDEN)),
        "mw3": init(ks[12], (HIDDEN, LOGITS)), "mb3": init(ks[13], (1, LOGITS)),
    }

    h_sequence = jax.random.normal(ks[14], (B, S, D), dtype=jnp.float32)
    data = jax.random.normal(ks[15], (B, DATA_DIM), dtype=jnp.float32)

    packed = pack_params(params, dims)
    logits = attend_approximator_forward(h_sequence, data, packed, dims)
    logits = jax.block_until_ready(logits)

    ref = reference_forward(h_sequence, data, params)
    assert logits.shape == (B, LOGITS)
    # Exact softmax division + f32 everywhere: the tolerance only has to cover the
    # MXU f32 pass-decomposition and the (exact) attention reassociation, i.e. it is
    # ~10-100x tighter than the previous 1e-2 and still catches any packing bug.
    assert np.allclose(np.asarray(logits), np.asarray(ref), rtol=1e-3, atol=5e-4)

    print("KERNEL_OK")
</pallas_src>

<mosaic_0001>
module attributes {stable_mosaic.version = 11 : i64} {
  func.func @fused_attend_kernel(%arg0: memref<2x8x16xf32, #tpu.memory_space<vmem>>, %arg1: memref<2x64xf32, #tpu.memory_space<vmem>>, %arg2: memref<272x128xf32, #tpu.memory_space<vmem>>, %arg3: memref<16x128xf32, #tpu.memory_space<vmem>>, %arg4: memref<2x10xf32, #tpu.memory_space<vmem>>) attributes {dimension_semantics = [], scalar_prefetch = 0 : i64, scratch_operands = 0 : i64, tpu.core_type = #tpu.core_type<tc>} {
    %c0 = arith.constant 0 : index
    %c0_0 = arith.constant 0 : index
    %c0_1 = arith.constant 0 : index
    %0 = vector.load %arg0[%c0, %c0_0, %c0_1] : memref<2x8x16xf32, #tpu.memory_space<vmem>>, vector<2x8x16xf32>
    %1 = vector.extract_strided_slice %0 {offsets = [0, 7, 0], sizes = [2, 1, 16], strides = [1, 1, 1]} : vector<2x8x16xf32> to vector<2x1x16xf32>
    %2 = vector.shape_cast %1 : vector<2x1x16xf32> to vector<2x16xf32>
    %c0_2 = arith.constant 0 : index
    %c0_3 = arith.constant 0 : index
    %3 = vector.load %arg2[%c0_2, %c0_3] : memref<272x128xf32, #tpu.memory_space<vmem>>, vector<16x8xf32>
    %c16 = arith.constant 16 : index
    %c0_4 = arith.constant 0 : index
    %4 = vector.load %arg2[%c16, %c0_4] : memref<272x128xf32, #tpu.memory_space<vmem>>, vector<8x16xf32>
    %c24 = arith.constant 24 : index
    %c0_5 = arith.constant 0 : index
    %5 = vector.load %arg2[%c24, %c0_5] : memref<272x128xf32, #tpu.memory_space<vmem>>, vector<16x8xf32>
    %c40 = arith.constant 40 : index
    %c0_6 = arith.constant 0 : index
    %6 = vector.load %arg2[%c40, %c0_6] : memref<272x128xf32, #tpu.memory_space<vmem>>, vector<8x16xf32>
    %c48 = arith.constant 48 : index
    %c0_7 = arith.constant 0 : index
    %7 = vector.load %arg2[%c48, %c0_7] : memref<272x128xf32, #tpu.memory_space<vmem>>, vector<16x64xf32>
    %c64 = arith.constant 64 : index
    %c0_8 = arith.constant 0 : index
    %8 = vector.load %arg2[%c64, %c0_8] : memref<272x128xf32, #tpu.memory_space<vmem>>, vector<64x16xf32>
    %c128 = arith.constant 128 : index
    %c0_9 = arith.constant 0 : index
    %9 = vector.load %arg2[%c128, %c0_9] : memref<272x128xf32, #tpu.memory_space<vmem>>, vector<64x32xf32>
    %c192 = arith.constant 192 : index
    %c0_10 = arith.constant 0 : index
    %10 = vector.load %arg2[%c192, %c0_10] : memref<272x128xf32, #tpu.memory_space<vmem>>, vector<16x32xf32>
    %c208 = arith.constant 208 : index
    %c0_11 = arith.constant 0 : index
    %11 = vector.load %arg2[%c208, %c0_11] : memref<272x128xf32, #tpu.memory_space<vmem>>, vector<32x32xf32>
    %c240 = arith.constant 240 : index
    %c0_12 = arith.constant 0 : index
    %12 = vector.load %arg2[%c240, %c0_12] : memref<272x128xf32, #tpu.memory_space<vmem>>, vector<32x10xf32>
    %c0_13 = arith.constant 0 : index
    %c0_14 = arith.constant 0 : index
    %13 = vector.load %arg3[%c0_13, %c0_14] : memref<16x128xf32, #tpu.memory_space<vmem>>, vector<1x16xf32>
    %c1 = arith.constant 1 : index
    %c0_15 = arith.constant 0 : index
    %14 = vector.load %arg3[%c1, %c0_15] : memref<16x128xf32, #tpu.memory_space<vmem>>, vector<1x16xf32>
    %c2 = arith.constant 2 : index
    %c0_16 = arith.constant 0 : index
    %15 = vector.load %arg3[%c2, %c0_16] : memref<16x128xf32, #tpu.memory_space<vmem>>, vector<1x16xf32>
    %c3 = arith.constant 3 : index
    %c0_17 = arith.constant 0 : index
    %16 = vector.load %arg3[%c3, %c0_17] : memref<16x128xf32, #tpu.memory_space<vmem>>, vector<1x16xf32>
    %c4 = arith.constant 4 : index
    %c0_18 = arith.constant 0 : index
    %17 = vector.load %arg3[%c4, %c0_18] : memref<16x128xf32, #tpu.memory_space<vmem>>, vector<1x64xf32>
    %c5 = arith.constant 5 : index
    %c0_19 = arith.constant 0 : index
    %18 = vector.load %arg3[%c5, %c0_19] : memref<16x128xf32, #tpu.memory_space<vmem>>, vector<1x16xf32>
    %c6 = arith.constant 6 : index
    %c0_20 = arith.constant 0 : index
    %19 = vector.load %arg3[%c6, %c0_20] : memref<16x128xf32, #tpu.memory_space<vmem>>, vector<1x32xf32>
    %c7 = arith.constant 7 : index
    %c0_21 = arith.constant 0 : index
    %20 = vector.load %arg3[%c7, %c0_21] : memref<16x128xf32, #tpu.memory_space<vmem>>, vector<1x32xf32>
    %c8 = arith.constant 8 : index
    %c0_22 = arith.constant 0 : index
    %21 = vector.load %arg3[%c8, %c0_22] : memref<16x128xf32, #tpu.memory_space<vmem>>, vector<1x10xf32>
    %cst = arith.constant dense<0.000000e+00> : vector<2x8xf32>
    %22 = tpu.matmul %2, %3, %cst {dimension_numbers = #tpu.dot_dimension_numbers<[1], [0], [0], [1], [0, 0, 1, 1], [], []>} : vector<2x16xf32>, vector<16x8xf32>, vector<2x8xf32> -> vector<2x8xf32>
    %cst_23 = arith.constant dense<0.000000e+00> : vector<2x16xf32>
    %23 = tpu.matmul %22, %4, %cst_23 {dimension_numbers = #tpu.dot_dimension_numbers<[1], [0], [0], [1], [0, 0, 1, 1], [], []>} : vector<2x8xf32>, vector<8x16xf32>, vector<2x16xf32> -> vector<2x16xf32>
    %24 = vector.shape_cast %23 : vector<2x16xf32> to vector<2x1x16xf32>
    %25 = vector.broadcast %24 : vector<2x1x16xf32> to vector<2x8x16xf32>
    %26 = arith.mulf %25, %0 : vector<2x8x16xf32>
    %cst_24 = arith.constant dense<0.000000e+00> : vector<2x8xf32>
    %27 = vector.multi_reduction <add>, %26, %cst_24 [2] : vector<2x8x16xf32> to vector<2x8xf32>
    %cst_25 = arith.constant dense<0xFF800000> : vector<2xf32>
    %28 = vector.multi_reduction <maximumf>, %27, %cst_25 [1] : vector<2x8xf32> to vector<2xf32>
    %29 = vector.shape_cast %28 : vector<2xf32> to vector<2x1xf32>
    %30 = vector.broadcast %29 : vector<2x1xf32> to vector<2x8xf32>
    %31 = arith.subf %27, %30 : vector<2x8xf32>
    %32 = math.exp %31 : vector<2x8xf32>
    %cst_26 = arith.constant dense<0.000000e+00> : vector<2xf32>
    %33 = vector.multi_reduction <add>, %32, %cst_26 [1] : vector<2x8xf32> to vector<2xf32>
    %34 = vector.shape_cast %33 : vector<2xf32> to vector<2x1xf32>
    %35 = vector.broadcast %34 : vector<2x1xf32> to vector<2x8xf32>
    %36 = arith.divf %32, %35 : vector<2x8xf32>
    %37 = vector.shape_cast %36 : vector<2x8xf32> to vector<2x8x1xf32>
    %38 = vector.broadcast %37 : vector<2x8x1xf32> to vector<2x8x16xf32>
    %39 = arith.mulf %38, %0 : vector<2x8x16xf32>
    %cst_27 = arith.constant dense<0.000000e+00> : vector<2x16xf32>
    %40 = vector.multi_reduction <add>, %39, %cst_27 [1] : vector<2x8x16xf32> to vector<2x16xf32>
    %cst_28 = arith.constant dense<0.000000e+00> : vector<2x8xf32>
    %41 = tpu.matmul %40, %5, %cst_28 {dimension_numbers = #tpu.dot_dimension_numbers<[1], [0], [0], [1], [0, 0, 1, 1], [], []>} : vector<2x16xf32>, vector<16x8xf32>, vector<2x8xf32> -> vector<2x8xf32>
    %cst_29 = arith.constant dense<0.000000e+00> : vector<2x16xf32>
    %42 = tpu.matmul %41, %6, %cst_29 {dimension_numbers = #tpu.dot_dimension_numbers<[1], [0], [0], [1], [0, 0, 1, 1], [], []>} : vector<2x8xf32>, vector<8x16xf32>, vector<2x16xf32> -> vector<2x16xf32>
    %43 = arith.addf %2, %42 : vector<2x16xf32>
    %cst_30 = arith.constant dense<0.000000e+00> : vector<2xf32>
    %44 = vector.multi_reduction <add>, %43, %cst_30 [1] : vector<2x16xf32> to vector<2xf32>
    %45 = vector.shape_cast %44 : vector<2xf32> to vector<2x1xf32>
    %cst_31 = arith.constant 1.600000e+01 : f32
    %46 = vector.broadcast %cst_31 : f32 to vector<2x1xf32>
    %47 = arith.divf %45, %46 : vector<2x1xf32>
    %48 = vector.broadcast %47 : vector<2x1xf32> to vector<2x16xf32>
    %49 = arith.subf %43, %48 : vector<2x16xf32>
    %50 = arith.mulf %49, %49 : vector<2x16xf32>
    %cst_32 = arith.constant dense<0.000000e+00> : vector<2xf32>
    %51 = vector.multi_reduction <add>, %50, %cst_32 [1] : vector<2x16xf32> to vector<2xf32>
    %52 = vector.shape_cast %51 : vector<2xf32> to vector<2x1xf32>
    %cst_33 = arith.constant 1.600000e+01 : f32
    %53 = vector.broadcast %cst_33 : f32 to vector<2x1xf32>
    %54 = arith.divf %52, %53 : vector<2x1xf32>
    %55 = vector.broadcast %47 : vector<2x1xf32> to vector<2x16xf32>
    %56 = arith.subf %43, %55 : vector<2x16xf32>
    %cst_34 = arith.constant 9.99999974E-6 : f32
    %57 = vector.broadcast %cst_34 : f32 to vector<2x1xf32>
    %58 = arith.addf %54, %57 : vector<2x1xf32>
    %59 = math.rsqrt %58 : vector<2x1xf32>
    %60 = vector.broadcast %59 : vector<2x1xf32> to vector<2x16xf32>
    %61 = arith.mulf %56, %60 : vector<2x16xf32>
    %62 = vector.broadcast %13 : vector<1x16xf32> to vector<2x16xf32>
    %63 = arith.mulf %61, %62 : vector<2x16xf32>
    %64 = vector.broadcast %14 : vector<1x16xf32> to vector<2x16xf32>
    %65 = arith.addf %63, %64 : vector<2x16xf32>
    %cst_35 = arith.constant dense<0.000000e+00> : vector<2x64xf32>
    %66 = tpu.matmul %65, %7, %cst_35 {dimension_numbers = #tpu.dot_dimension_numbers<[1], [0], [0], [1], [0, 0, 1, 1], [], []>} : vector<2x16xf32>, vector<16x64xf32>, vector<2x64xf32> -> vector<2x64xf32>
    %67 = vector.broadcast %17 : vector<1x64xf32> to vector<2x64xf32>
    %68 = arith.addf %66, %67 : vector<2x64xf32>
    %cst_36 = arith.constant 0.000000e+00 : f32
    %69 = vector.broadcast %cst_36 : f32 to vector<2x64xf32>
    %70 = arith.maximumf %68, %69 : vector<2x64xf32>
    %cst_37 = arith.constant dense<0.000000e+00> : vector<2x16xf32>
    %71 = tpu.matmul %70, %8, %cst_37 {dimension_numbers = #tpu.dot_dimension_numbers<[1], [0], [0], [1], [0, 0, 1, 1], [], []>} : vector<2x64xf32>, vector<64x16xf32>, vector<2x16xf32> -> vector<2x16xf32>
    %72 = vector.broadcast %18 : vector<1x16xf32> to vector<2x16xf32>
    %73 = arith.addf %71, %72 : vector<2x16xf32>
    %74 = arith.addf %73, %65 : vector<2x16xf32>
    %cst_38 = arith.constant dense<0.000000e+00> : vector<2xf32>
    %75 = vector.multi_reduction <add>, %74, %cst_38 [1] : vector<2x16xf32> to vector<2xf32>
    %76 = vector.shape_cast %75 : vector<2xf32> to vector<2x1xf32>
    %cst_39 = arith.constant 1.600000e+01 : f32
    %77 = vector.broadcast %cst_39 : f32 to vector<2x1xf32>
    %78 = arith.divf %76, %77 : vector<2x1xf32>
    %79 = vector.broadcast %78 : vector<2x1xf32> to vector<2x16xf32>
    %80 = arith.subf %74, %79 : vector<2x16xf32>
    %81 = arith.mulf %80, %80 : vector<2x16xf32>
    %cst_40 = arith.constant dense<0.000000e+00> : vector<2xf32>
    %82 = vector.multi_reduction <add>, %81, %cst_40 [1] : vector<2x16xf32> to vector<2xf32>
    %83 = vector.shape_cast %82 : vector<2xf32> to vector<2x1xf32>
    %cst_41 = arith.constant 1.600000e+01 : f32
    %84 = vector.broadcast %cst_41 : f32 to vector<2x1xf32>
    %85 = arith.divf %83, %84 : vector<2x1xf32>
    %86 = vector.broadcast %78 : vector<2x1xf32> to vector<2x16xf32>
    %87 = arith.subf %74, %86 : vector<2x16xf32>
    %cst_42 = arith.constant 9.99999974E-6 : f32
    %88 = vector.broadcast %cst_42 : f32 to vector<2x1xf32>
    %89 = arith.addf %85, %88 : vector<2x1xf32>
    %90 = math.rsqrt %89 : vector<2x1xf32>
    %91 = vector.broadcast %90 : vector<2x1xf32> to vector<2x16xf32>
    %92 = arith.mulf %87, %91 : vector<2x16xf32>
    %93 = vector.broadcast %15 : vector<1x16xf32> to vector<2x16xf32>
    %94 = arith.mulf %92, %93 : vector<2x16xf32>
    %95 = vector.broadcast %16 : vector<1x16xf32> to vector<2x16xf32>
    %96 = arith.addf %94, %95 : vector<2x16xf32>
    %c0_43 = arith.constant 0 : index
    %c0_44 = arith.constant 0 : index
    %97 = vector.load %arg1[%c0_43, %c0_44] : memref<2x64xf32, #tpu.memory_space<vmem>>, vector<2x64xf32>
    %cst_45 = arith.constant dense<0.000000e+00> : vector<2x32xf32>
    %98 = tpu.matmul %97, %9, %cst_45 {dimension_numbers = #tpu.dot_dimension_numbers<[1], [0], [0], [1], [0, 0, 1, 1], [], []>} : vector<2x64xf32>, vector<64x32xf32>, vector<2x32xf32> -> vector<2x32xf32>
    %cst_46 = arith.constant dense<0.000000e+00> : vector<2x32xf32>
    %99 = tpu.matmul %96, %10, %cst_46 {dimension_numbers = #tpu.dot_dimension_numbers<[1], [0], [0], [1], [0, 0, 1, 1], [], []>} : vector<2x16xf32>, vector<16x32xf32>, vector<2x32xf32> -> vector<2x32xf32>
    %100 = arith.addf %98, %99 : vector<2x32xf32>
    %101 = vector.broadcast %19 : vector<1x32xf32> to vector<2x32xf32>
    %102 = arith.addf %100, %101 : vector<2x32xf32>
    %cst_47 = arith.constant 0.000000e+00 : f32
    %103 = vector.broadcast %cst_47 : f32 to vector<2x32xf32>
    %104 = arith.maximumf %102, %103 : vector<2x32xf32>
    %cst_48 = arith.constant dense<0.000000e+00> : vector<2x32xf32>
    %105 = tpu.matmul %104, %11, %cst_48 {dimension_numbers = #tpu.dot_dimension_numbers<[1], [0], [0], [1], [0, 0, 1, 1], [], []>} : vector<2x32xf32>, vector<32x32xf32>, vector<2x32xf32> -> vector<2x32xf32>
    %106 = vector.broadcast %20 : vector<1x32xf32> to vector<2x32xf32>
    %107 = arith.addf %105, %106 : vector<2x32xf32>
    %cst_49 = arith.constant 0.000000e+00 : f32
    %108 = vector.broadcast %cst_49 : f32 to vector<2x32xf32>
    %109 = arith.maximumf %107, %108 : vector<2x32xf32>
    %cst_50 = arith.constant dense<0.000000e+00> : vector<2x10xf32>
    %110 = tpu.matmul %109, %12, %cst_50 {dimension_numbers = #tpu.dot_dimension_numbers<[1], [0], [0], [1], [0, 0, 1, 1], [], []>} : vector<2x32xf32>, vector<32x10xf32>, vector<2x10xf32> -> vector<2x10xf32>
    %111 = vector.broadcast %21 : vector<1x10xf32> to vector<2x10xf32>
    %112 = arith.addf %110, %111 : vector<2x10xf32>
    %c0_51 = arith.constant 0 : index
    %c0_52 = arith.constant 0 : index
    %113 = vector.load %arg4[%c0_51, %c0_52] : memref<2x10xf32, #tpu.memory_space<vmem>>, vector<2x10xf32>
    tpu.vector_store %arg4[%c0_51, %c0_52], %112 {strides = array<i32>} : memref<2x10xf32, #tpu.memory_space<vmem>>, vector<2x10xf32>,
    return
  }
}

</mosaic_0001>

<bundles_post_ra>
// kernel: tpu_custom_call.1
= control target key start
LH: loop header
LB: loop body
LE: loop exit
PB: predicated region body
PF: predicated region fallthrough
CT: control target
= control target key end

     0   :  { %9 = vsyncpa [#allocation3], 0  ;;  %s1573_s0 = inlined_call_operand.hbm [shape: f32[2,8,16], index: 0, kind: input, shape index: {}]   ;;  %s1574_s1 = inlined_call_operand.hbm [shape: f32[2,64], index: 1, kind: input, shape index: {}]   ;;  %s1575_s2 = inlined_call_operand.hbm [shape: f32[272,128], index: 2, kind: input, shape index: {}]   ;;  %s1576_s3 = inlined_call_operand.hbm [shape: f32[16,128], index: 3, kind: input, shape index: {}]   ;;  %s1577_s4 = inlined_call_operand.hbm [shape: f32[2,10], index: 4, kind: output, shape index: {}]  }
   0x1   :  { %10 = vsyncpa [#allocation6], 0 }
   0x2   :  { %11 = vsyncpa [#allocation9], 0 }
   0x3   :  { %12 = vsyncpa [#allocation4], 0  ;;  %s1433_s15 = smov [#allocation5]   ;;  %s1434_s17 = smov [#allocation2]  }
   0x4   :  { %s31_s16 = sshll.u32 %s1433_s15, 4  ;;  %s18_s18 = sshll.u32 %s1434_s17, 4  ;;  %s32_s16 = int_to_ptr.vmem [resolvable:$true] %s31_s16  ;;  %s19_s18 = int_to_ptr.vmem [resolvable:$true] %s18_s18 }
   0x5   :  { %s1333_s19 = scalar_lea.vmem %s32_s16, 32  ;;  %p1338_p1 = scmp.lt.s32.totalorder %s32_s16, %s32_s16 }
   0x6   :  { %p1334_p0 = scmp.ne.s32.totalorder %s32_s16, %s1333_s19  ;;  %p1339_p2 = scmp.lt.s32.totalorder %s1333_s19, %s1333_s19 }
   0x8   :  { %p1340_p3 = por %p1339_p2, %p1338_p1 }
   0xa   :  { %p1341_p4 = pnand %p1340_p3, %p1334_p0 }
   0xc   :  { %1344 = shalt.err (!%p1341_p4)
}
   0xd   :  { %34 = dma.hbm_to_vmem [thread:$0]  %s1574_s1, 32, %s32_s16, [#allocation6]  }
   0xe   :  { %s1353_s22 = scalar_lea.vmem %s19_s18, 256  ;;  %p1358_p6 = scmp.lt.s32.totalorder %s19_s18, %s19_s18 }
   0xf   :  { %p1354_p5 = scmp.ne.s32.totalorder %s19_s18, %s1353_s22  ;;  %p1359_p7 = scmp.lt.s32.totalorder %s1353_s22, %s1353_s22 }
  0x11   :  { %p1360_p8 = por %p1359_p7, %p1358_p6 }
  0x13   :  { %p1361_p9 = pnand %p1360_p8, %p1354_p5 }
  0x15   :  { %1364 = shalt.err (!%p1361_p9)
}
  0x16   :  { %s1435_s23 = smov 128   ;;  %s1436_s24 = smov 8  }
  0x17   :  { %24 = dma.hbm_to_vmem [thread:$0]  %s1573_s0, 256, %s19_s18, [#allocation3], %s1435_s23, %s1435_s23, %s1436_s24  }
  0x18   :  { %s1437_s27 = smov [#allocation7]   ;;  %s1438_s29 = smov [#allocation8]  }
  0x19   :  { %s40_s28 = sshll.u32 %s1437_s27, 4  ;;  %s52_s30 = sshll.u32 %s1438_s29, 4  ;;  %s41_s28 = int_to_ptr.vmem [resolvable:$true] %s40_s28  ;;  %s53_s30 = int_to_ptr.vmem [resolvable:$true] %s52_s30 }
  0x1a   :  { %s1373_s1 = scalar_lea.vmem %s41_s28, 4352  ;;  %p1378_p11 = scmp.lt.s32.totalorder %s41_s28, %s41_s28 }
  0x1b   :  { %p1374_p10 = scmp.ne.s32.totalorder %s41_s28, %s1373_s1  ;;  %p1379_p12 = scmp.lt.s32.totalorder %s1373_s1, %s1373_s1 }
  0x1d   :  { %p1380_p13 = por %p1379_p12, %p1378_p11 }
  0x1f   :  { %p1381_p0 = pnand %p1380_p13, %p1374_p10 }
  0x21   :  { %1384 = shalt.err (!%p1381_p0)
}
  0x22   :  { %46 = dma.hbm_to_vmem [thread:$0]  %s1575_s2, 4352, %s41_s28, [#allocation6], %s1435_s23, %s1435_s23, %s1436_s24  }
  0x23   :  { %s1393_s7 = scalar_lea.vmem %s53_s30, 256  ;;  %p1398_p2 = scmp.lt.s32.totalorder %s53_s30, %s53_s30 }
  0x24   :  { %p1394_p1 = scmp.ne.s32.totalorder %s53_s30, %s1393_s7  ;;  %p1399_p3 = scmp.lt.s32.totalorder %s1393_s7, %s1393_s7 }
  0x26   :  { %p1400_p4 = por %p1399_p3, %p1398_p2 }
  0x28   :  { %p1401_p5 = pnand %p1400_p4, %p1394_p1 }
  0x2a   :  { %1404 = shalt.err (!%p1401_p5)
}
  0x2b   :  { %58 = dma.hbm_to_vmem [thread:$0]  %s1576_s3, 256, %s53_s30, [#allocation9], %s1435_s23, %s1435_s23, %s1436_s24  }
  0x2c   :  { %1425 = dma.done.wait [#allocation3], 256  }
  0x2d   :  { %1426 = vsyncadd [#allocation3], 4294967040 }
  0x2e   :  { %1427 = dma.done.wait [#allocation6], 4384  }
  0x2f   :  { %1428 = vsyncadd [#allocation6], 4294962912 }
  0x30   :  { %1429 = dma.done.wait [#allocation9], 256  }
  0x31   :  { %1430 = vsyncadd [#allocation9], 4294967040  ;;  %v1439_v0 = vmov 0.0   ;;  %vm1440_vm0 = vmmov 0   ;;  %v74_v1 = vld [vmem:[#allocation7 + $0x8] sm:$0xff]  ;;  %v73_v2 = vld [vmem:[#allocation7] sm:$0xff]  ;;  %v273_v13 = vlaneseq }
  0x32   :  { %1200 = vmatprep.subr.mxu0 %v1439_v0  ;;  %1204 = vmatprep.mubr.msk.f32.mxu0 %vm1440_vm0, %v1439_v0  ;;  %v1487_v3 = vld [vmem:[#allocation2] sm:$0xff]  ;;  %v1489_v4 = vld [vmem:[#allocation2 + $0x8] sm:$0xff]  ;;  %vm120_vm1 = vcmask 1041409   ;;  %vm122_vm2 = vcmask 130048   ;;  %vm195_vm3 = vcmask 64512   ;;  %vm324_vm4 = vcmask 58368  }
  0x33   :  { %1212 = vmatprep.subr.mxu1 %v1439_v0  ;;  %1216 = vmatprep.mubr.msk.f32.mxu1 %vm1440_vm0, %v1439_v0  ;;  %v118_v5 = vrot.slane %v1487_v3, 7  ;;  %v119_v6 = vrot.slane %v1489_v4, 6  ;;  %v75_v7 = vld [vmem:[#allocation7 + $0x10] sm:$0xff]  ;;  %v1441_v11 = vmov 1966171168   ;;  %v274_v15 = vshrl.u32 %v273_v13, 7 }
  0x34   :  { %1201 = vmatpush3.msra.mxu0 %v74_v1  ;;  %v271_v12 = vunpack.c.l.s4 %v1441_v11  ;;  %v313_v30 = vand.u32 127, %v273_v13  ;;  %v1442_v38 = vmov 0   ;;  %v77_v62 = vld [vmem:[#allocation7 + $0x20] sm:$0xff]  ;;  %v76_v63 = vld [vmem:[#allocation7 + $0x18] sm:$0xff]  ;;  %v78_v1 = vld [vmem:[#allocation7 + $0x28] sm:$0xff]  ;;  %vm567_vm5 = vcmask 130055  }
  0x35   :  { %1202 = vmatprep.subr.mxu0 %v1439_v0  ;;  %v121_v8 = vsel %vm120_vm1, %v119_v6, %v118_v5  ;;  %v294_v19 = vsub.s32 0, %v274_v15  ;;  %1310 = vset.pattern.permute.xlu0 %v1442_v38  ;;  %v335_v39 = vsub.s32 1, %v274_v15  ;;  %vm571_vm6 = vcmask 122880   ;;  %s1443_s2 = smov [#allocation10]  }
  0x36   :  { %1203 = vmatpush3.msra.mxu0 %v73_v2  ;;  %v272_v14 = vunpack.c.0.s8 %v271_v12  ;;  %v316_v32 = vsub.s32 %v313_v30, %v274_v15  ;;  %1309 = vset.pattern.permute.xlu1 %v1442_v38  ;;  %vm709_vm7 = vcmask 523264   ;;  %vm785_vm8 = vcmask 123904   ;;  %s1126_s3 = sshll.u32 %s1443_s2, 4  ;;  %s1127_s3 = int_to_ptr.vmem [resolvable:$true] %s1126_s3 }
  0x37   :  { %1207 = vmatprep.subr.mxu0 %v1439_v0  ;;  %1205 = vmatmul.mubr.msk.f32.vlgmr.msra.gmra.mxu0 %vm122_vm2, %v121_v8  ;;  %vm966_vm9 = vcmask 261120   ;;  %vm1118_vm10 = vcmask 74752   ;;  %s1405_s9 = scalar_lea.vmem %s1127_s3, 32  ;;  %p1410_p7 = scmp.lt.s32.totalorder %s1127_s3, %s1127_s3 }
  0x38   :  { %1208 = vmatpush3.msra.mxu0 %v75_v7  ;;  %1209 = vmatprep.mubr.msk.f32.mxu0 %vm1440_vm0, %v1439_v0  ;;  %v275_v16 = vsub.s32 %v272_v14, %v274_v15  ;;  %p1406_p6 = scmp.ne.s32.totalorder %s1127_s3, %s1405_s9  ;;  %p1411_p8 = scmp.lt.s32.totalorder %s1405_s9, %s1405_s9 }
  0x39   :  { %1219 = vmatprep.subr.mxu0 %v1439_v0  ;;  %1213 = vmatpush3.msra.mxu1 %v77_v62  ;;  %v1142_v62 = vld [vmem:[#allocation8 + $0x1] ss:$0 sm:$0xff] }
  0x3a   :  { %1214 = vmatprep.subr.mxu1 %v1439_v0  ;;  %p1412_p9 = por %p1411_p8, %p1410_p7 }
  0x3b   :  { %1215 = vmatpush3.msra.mxu1 %v76_v63 }
  0x3c   :  { %1224 = vmatprep.subr.mxu1 %v1439_v0  ;;  %p1413_p10 = pnand %p1412_p9, %p1406_p6 }
  0xf7   :  { %v191_v9 = vpop.f32.mrf.mxu0 }
  0xf8   :  { %1210 = vmatmul.mubr.msk.f32.vlgmr.msra.gmra.mxu0 %vm195_vm3, %v191_v9 }
  0xf9   :  { %v1206_v10 = vpop.f32.mrf.mxu0  ;;  %1221 = vmatprep.mubr.msk.f32.mxu0 %vm1440_vm0, %v1439_v0  ;;  %1220 = vmatpush3.msra.mxu0 %v78_v1 }
  0xfa   :  { %1231 = vmatprep.subr.mxu0 %v1439_v0 }
 0x1b8   :  { %v265_v17 = vpop.f32.mrf.mxu0 }
 0x1b9   :  { %v276_v18 = vrot.slane %v265_v17, %v275_v16 }
 0x1ba   :  { %v1211_v20 = vpop.f32.mrf.mxu0 }
 0x1bb   :  { %v277_v21 = vcombine.high %v276_v18, %v276_v18  ;;  %v284_v22 = vrot.slane %v276_v18, %v275_v16 }
 0x1bd   :  { %v291_v23 = vrot.slane %v277_v21, %v275_v16  ;;  %v295_v24 = vrot.slane %v284_v22, %v294_v19 }
 0x1bf   :  { %v302_v25 = vmul.f32 %v295_v24, %v1487_v3  ;;  %v299_v26 = vrot.slane %v291_v23, %v294_v19 }
 0x1c1   :  { %v304_v27 = vsel %vm122_vm2, %v302_v25, 0.0  ;;  %v303_v28 = vmul.f32 %v299_v26, %v1489_v4 }
 0x1c2   :  { %305 = vadd.xlane.f32.xlu0 %v304_v27 }
 0x1c3   :  { %v307_v29 = vsel %vm122_vm2, %v303_v28, 0.0 }
 0x1c6   :  { %308 = vadd.xlane.f32.xlu0 %v307_v29 }
 0x24b   :  { %v306_v31 = vpop.xlane.xlu0 %305 }
 0x24c   :  { %v317_v34 = vrot.slane %v306_v31, %v316_v32 }
 0x24f   :  { %v309_v33 = vpop.xlane.xlu0 %308 }
 0x250   :  { %v321_v35 = vrot.slane %v309_v33, %v316_v32 }
 0x252   :  { %v322_v36 = vsel %vm120_vm1, %v321_v35, %v317_v34 }
 0x253   :  { %v325_v37 = vsel %vm324_vm4, %v322_v36, -inf }
 0x254   :  { %326 = vmax.xlane.f32.xlu1 %v325_v37 }
 0x2dd   :  { %v327_v40 = vpop.xlane.xlu1 %326 }
 0x2de   :  { %v332_v41 = vrot.slane %v327_v40, %v294_v19  ;;  %v336_v42 = vrot.slane %v327_v40, %v335_v39 }
 0x2e0   :  { %v339_v43 = vsub.f32 %v306_v31, %v332_v41  ;;  %v340_v44 = vsub.f32 %v309_v33, %v336_v42 }
 0x2e2   :  { %v341_v45 = vmul.f32 1.442695, %v339_v43  ;;  %v343_v46 = vmul.f32 1.442695, %v340_v44  ;;  %v80_v44 = vld [vmem:[#allocation7 + $0x38] sm:$0xff] }
 0x2e4   :  { %1311 = vpow2.f32 %v341_v45  ;;  %v79_v45 = vld [vmem:[#allocation7 + $0x30] sm:$0xff] }
 0x2e5   :  { %1313 = vpow2.f32 %v343_v46  ;;  %v88_v46 = vld [vmem:[#allocation7 + $0x78] sm:$0xff] }
 0x2f1   :  { %v1312_v47 = vpop.eup %1311 }
 0x2f2   :  { %v1314_v48 = vpop.eup %1313  ;;  %348 = vperm.xlu1 %1309, %v1312_v47  }
 0x2f3   :  { %351 = vperm.xlu0 %1310, %v1314_v48  }
 0x36d   :  { %v349_v49 = vpop.permute.xlu1 %348 }
 0x36e   :  { %v352_v50 = vpop.permute.xlu0 %351  ;;  %v356_v51 = vrot.slane %v349_v49, %v316_v32  ;;  %v85_v49 = vld [vmem:[#allocation7 + $0x60] sm:$0xff] }
 0x36f   :  { %v360_v52 = vrot.slane %v352_v50, %v316_v32  ;;  %v84_v50 = vld [vmem:[#allocation7 + $0x58] sm:$0xff] }
 0x371   :  { %v361_v53 = vsel %vm120_vm1, %v360_v52, %v356_v51 }
 0x372   :  { %v363_v54 = vsel %vm324_vm4, %v361_v53, 0.0 }
 0x373   :  { %364 = vadd.xlane.f32.xlu1 %v363_v54 }
 0x3fc   :  { %v365_v55 = vpop.xlane.xlu1 %364 }
 0x3fd   :  { %v370_v56 = vrot.slane %v365_v55, %v294_v19  ;;  %v374_v57 = vrot.slane %v365_v55, %v335_v39 }
 0x3ff   :  { %1315 = vrcp.f32 %v370_v56 }
 0x400   :  { %1317 = vrcp.f32 %v374_v57 }
 0x40c   :  { %v1316_v58 = vpop.eup %1315 }
 0x40d   :  { %v378_v59 = vmul.f32 %v1316_v58, %v1312_v47  ;;  %v1318_v60 = vpop.eup %1317  ;;  %v87_v47 = vld [vmem:[#allocation7 + $0x70] sm:$0xff] }
 0x40e   :  { %v380_v61 = vmul.f32 %v1318_v60, %v1314_v48  ;;  %v86_v48 = vld [vmem:[#allocation7 + $0x68] sm:$0xff] }
 0x40f   :  { %383 = vperm.xlu0 %1310, %v378_v59   ;;  %v1141_v59 = vld [vmem:[#allocation8] ss:$0 sm:$0xff] }
 0x413   :  { %388 = vperm.xlu0 %1310, %v380_v61  }
 0x48a   :  { %v384_v2 = vpop.permute.xlu0 %383 }
 0x48b   :  { %v391_v5 = vmul.f32 %v384_v2, %v1487_v3 }
 0x48d   :  { %v393_v6 = vsel %vm122_vm2, %v391_v5, 0.0 }
 0x48e   :  { %v394_v7 = vrot.slane %v393_v6, 4  ;;  %v389_v8 = vpop.permute.xlu0 %388 }
 0x48f   :  { %v392_v9 = vmul.f32 %v389_v8, %v1489_v4 }
 0x490   :  { %v395_v10 = vadd.f32 %v394_v7, %v393_v6 }
 0x491   :  { %v400_v11 = vsel %vm122_vm2, %v392_v9, 0.0 }
 0x492   :  { %v396_v12 = vrot.slane %v395_v10, 2  ;;  %v401_v13 = vrot.slane %v400_v11, 4 }
 0x494   :  { %v397_v14 = vadd.f32 %v396_v12, %v395_v10  ;;  %v402_v15 = vadd.f32 %v401_v13, %v400_v11  ;;  %v83_v10 = vld [vmem:[#allocation7 + $0x50] sm:$0xff]  ;;  %v82_v11 = vld [vmem:[#allocation7 + $0x48] sm:$0xff]  ;;  %v81_v12 = vld [vmem:[#allocation7 + $0x40] sm:$0xff] }
 0x495   :  { %v1143_v13 = vld [vmem:[#allocation8 + $0x4] ss:$0 sm:$0xff] }
 0x496   :  { %v403_v16 = vrot.slane %v402_v15, 2  ;;  %v398_v17 = vrot.slane %v397_v14, 1 }
 0x498   :  { %v404_v18 = vadd.f32 %v403_v16, %v402_v15  ;;  %v399_v20 = vadd.f32 %v398_v17, %v397_v14 }
 0x49a   :  { %v405_v19 = vrot.slane %v404_v18, 1 }
 0x49c   :  { %v406_v21 = vadd.f32 %v405_v19, %v404_v18  ;;  %v1145_v18 = vld [vmem:[#allocation8 + $0x5] ss:$0 sm:$0xff] }
 0x49e   :  { %v409_v22 = vsel %vm120_vm1, %v406_v21, %v399_v20 }
 0x49f   :  { %1217 = vmatmul.mubr.msk.f32.vlgmr.msra.gmra.mxu1 %vm122_vm2, %v409_v22 }
 0x4a0   :  { %1228 = vmatprep.mubr.msk.f32.mxu1 %vm1440_vm0, %v1439_v0  ;;  %1225 = vmatpush3.msra.mxu1 %v80_v44  ;;  %v90_v44 = vld [vmem:[#allocation7 + $0x88] sm:$0xff] }
 0x4a1   :  { %1226 = vmatprep.subr.mxu1 %v1439_v0 }
 0x4a2   :  { %1227 = vmatpush3.msra.mxu1 %v79_v45  ;;  %v89_v45 = vld [vmem:[#allocation7 + $0x80] sm:$0xff] }
 0x4a3   :  { %1250 = vmatprep.subr.mxu1 %v1439_v0 }
 0x55f   :  { %v478_v23 = vpop.f32.mrf.mxu1 }
 0x560   :  { %1222 = vmatmul.mubr.msk.f32.vlgmr.msra.gmra.mxu0 %vm195_vm3, %v478_v23 }
 0x561   :  { %v1218_v24 = vpop.f32.mrf.mxu1  ;;  %1247 = vmatprep.mubr.msk.f32.mxu0 %vm1440_vm0, %v1439_v0  ;;  %1232 = vmatpush3.msra.mxu0 %v88_v46  ;;  %v809_v46 = vld [vmem:[#allocation5] sm:$0x3] }
 0x562   :  { %1233 = vmatprep.subr.mxu0 %v1439_v0 }
 0x563   :  { %1234 = vmatpush3.msra.mxu0 %v87_v47  ;;  %v102_v47 = vld [vmem:[#allocation7 + $0xe8] sm:$0xff] }
 0x564   :  { %1235 = vmatprep.subr.mxu0 %v1439_v0 }
 0x565   :  { %1236 = vmatpush3.msra.mxu0 %v86_v48  ;;  %v101_v48 = vld [vmem:[#allocation7 + $0xe0] sm:$0xff] }
 0x566   :  { %1237 = vmatprep.subr.mxu0 %v1439_v0 }
 0x567   :  { %1238 = vmatpush3.msra.mxu0 %v85_v49  ;;  %v100_v49 = vld [vmem:[#allocation7 + $0xd8] sm:$0xff] }
 0x568   :  { %1239 = vmatprep.subr.mxu0 %v1439_v0 }
 0x569   :  { %1240 = vmatpush3.msra.mxu0 %v84_v50  ;;  %v99_v50 = vld [vmem:[#allocation7 + $0xd0] sm:$0xff] }
 0x56a   :  { %1241 = vmatprep.subr.mxu0 %v1439_v0 }
 0x56b   :  { %1242 = vmatpush3.msra.mxu0 %v83_v10 }
 0x56c   :  { %1243 = vmatprep.subr.mxu0 %v1439_v0 }
 0x56d   :  { %1244 = vmatpush3.msra.mxu0 %v82_v11 }
 0x56e   :  { %1245 = vmatprep.subr.mxu0 %v1439_v0 }
 0x56f   :  { %1246 = vmatpush3.msra.mxu0 %v81_v12 }
 0x570   :  { %1276 = vmatprep.subr.mxu0 %v1439_v0 }
 0x620   :  { %v551_v25 = vpop.f32.mrf.mxu0 }
 0x621   :  { %v556_v26 = vrot.slane %v551_v25, 1  ;;  %v557_v27 = vrot.slane %v551_v25, 2 }
 0x622   :  { %v1223_v28 = vpop.f32.mrf.mxu0 }
 0x623   :  { %v561_v29 = vadd.f32 %v557_v27, %v1489_v4  ;;  %v560_v30 = vadd.f32 %v556_v26, %v1487_v3 }
 0x625   :  { %v568_v31 = vsel %vm567_vm5, %v560_v30, 0.0  ;;  %v564_v32 = vrot.slane %v561_v29, 7 }
 0x626   :  { %569 = vadd.xlane.f32.xlu0 %v568_v31 }
 0x627   :  { %v572_v33 = vsel %vm571_vm6, %v564_v32, 0.0 }
 0x628   :  { %573 = vadd.xlane.f32.xlu1 %v572_v33 }
 0x6af   :  { %v570_v34 = vpop.xlane.xlu0 %569 }
 0x6b0   :  { %v576_v37 = vmul.f32 0.0625, %v570_v34 }
 0x6b1   :  { %v574_v35 = vpop.xlane.xlu1 %573 }
 0x6b2   :  { %v577_v36 = vmul.f32 0.0625, %v574_v35  ;;  %v583_v40 = vsub.f32 %v560_v30, %v576_v37  ;;  %v97_v30 = vld [vmem:[#allocation7 + $0xc0] sm:$0xff]  ;;  %v1147_v35 = vld [vmem:[#allocation8 + $0x2] ss:$0 sm:$0xff]  ;;  %v1148_v37 = vld [vmem:[#allocation8 + $0x3] ss:$0 sm:$0xff] }
 0x6b4   :  { %v580_v38 = vrot.slane %v577_v36, 1  ;;  %v585_v4 = vmul.f32 %v583_v40, %v583_v40 }
 0x6b6   :  { %v584_v39 = vsub.f32 %v561_v29, %v580_v38  ;;  %v592_v3 = vsel %vm567_vm5, %v585_v4, 0.0  ;;  %v98_v29 = vld [vmem:[#allocation7 + $0xc8] sm:$0xff]  ;;  %v92_v4 = vld [vmem:[#allocation7 + $0x98] sm:$0xff] }
 0x6b8   :  { %v586_v41 = vmul.f32 %v584_v39, %v584_v39 }
 0x6ba   :  { %v589_v42 = vrot.slane %v586_v41, 7  ;;  %v95_v41 = vld [vmem:[#allocation7 + $0xb0] sm:$0xff] }
 0x6bc   :  { %v595_v43 = vsel %vm571_vm6, %v589_v42, 0.0  ;;  %v94_v42 = vld [vmem:[#allocation7 + $0xa8] sm:$0xff] }
 0x6bd   :  { %596 = vadd.xlane.f32.xlu1 %v595_v43  ;;  %v93_v43 = vld [vmem:[#allocation7 + $0xa0] sm:$0xff] }
 0x6c1   :  { %593 = vadd.xlane.f32.xlu1 %v592_v3  ;;  %v91_v3 = vld [vmem:[#allocation7 + $0x90] sm:$0xff] }
 0x746   :  { %v597_v51 = vpop.xlane.xlu1 %596 }
 0x747   :  { %v599_v52 = vmul.f32 0.0625, %v597_v51  ;;  %v106_v51 = vld [vmem:[#allocation7 + $0x108] sm:$0xff] }
 0x749   :  { %v601_v53 = vadd.f32 1e-05, %v599_v52 }
 0x74a   :  { %v594_v54 = vpop.xlane.xlu1 %593 }
 0x74b   :  { %1319 = vrsqrt.f32 %v601_v53  ;;  %v598_v55 = vmul.f32 0.0625, %v594_v54  ;;  %v1151_v54 = vld [vmem:[#allocation8 + $0x6] ss:$0 sm:$0xff] }
 0x74d   :  { %v600_v56 = vadd.f32 1e-05, %v598_v55 }
 0x74f   :  { %1321 = vrsqrt.f32 %v600_v56 }
 0x758   :  { %v1320_v57 = vpop.eup %1319 }
 0x759   :  { %v606_v58 = vrot.slane %v1320_v57, 1 }
 0x75b   :  { %v610_v60 = vmul.f32 %v606_v58, %v584_v39 }
 0x75c   :  { %v1322_v61 = vpop.eup %1321 }
 0x75d   :  { %v616_v63 = vmul.f32 %v1141_v59, %v610_v60  ;;  %v609_v1 = vmul.f32 %v1322_v61, %v583_v40  ;;  %v96_v40 = vld [vmem:[#allocation7 + $0xb8] sm:$0xff]  ;;  %v105_v60 = vld [vmem:[#allocation7 + $0x100] sm:$0xff] }
 0x75e   :  { %v104_v61 = vld [vmem:[#allocation7 + $0xf8] sm:$0xff] }
 0x75f   :  { %v615_v2 = vmul.f32 %v1141_v59, %v609_v1  ;;  %v622_v5 = vadd.f32 %v1142_v62, %v616_v63  ;;  %v1152_v63 = vld [vmem:[#allocation8 + $0x7] ss:$0 sm:$0xff] }
 0x761   :  { %v621_v6 = vadd.f32 %v1142_v62, %v615_v2  ;;  %v630_v8 = vrot.slane %v622_v5, 6  ;;  %v103_v62 = vld [vmem:[#allocation7 + $0xf0] sm:$0xff] }
 0x763   :  { %v629_v7 = vrot.slane %v621_v6, 7 }
 0x765   :  { %v631_v9 = vsel %vm120_vm1, %v630_v8, %v629_v7  ;;  %v1154_v7 = vld [vmem:[#allocation8 + $0x8] ss:$0 sm:$0xff] }
 0x766   :  { %1229 = vmatmul.mubr.msk.f32.vlgmr.msra.gmra.mxu1 %vm122_vm2, %v631_v9 }
 0x767   :  { %1254 = vmatprep.mubr.msk.f32.mxu1 %vm1440_vm0, %v1439_v0  ;;  %1251 = vmatpush3.msra.mxu1 %v98_v29 }
 0x768   :  { %1252 = vmatprep.subr.mxu1 %v1439_v0 }
 0x769   :  { %1253 = vmatpush3.msra.mxu1 %v97_v30 }
 0x76a   :  { %1257 = vmatprep.subr.mxu1 %v1439_v0 }
 0x826   :  { %v700_v14 = vpop.f32.mrf.mxu1 }
 0x827   :  { %v701_v15 = vadd.f32 %v1143_v13, %v700_v14 }
 0x828   :  { %v1230_v16 = vpop.f32.mrf.mxu1 }
 0x829   :  { %v704_v17 = vmax.f32 %v701_v15, 0.0 }
 0x82b   :  { %1248 = vmatmul.mubr.msk.f32.vlgmr.msra.gmra.mxu0 %vm709_vm7, %v704_v17 }
 0x82c   :  { %1284 = vmatprep.mubr.msk.f32.mxu0 %vm1440_vm0, %v1439_v0  ;;  %1277 = vmatpush3.msra.mxu0 %v102_v47 }
 0x82d   :  { %1278 = vmatprep.subr.mxu0 %v1439_v0 }
 0x82e   :  { %1279 = vmatpush3.msra.mxu0 %v101_v48 }
 0x82f   :  { %1280 = vmatprep.subr.mxu0 %v1439_v0 }
 0x830   :  { %1281 = vmatpush3.msra.mxu0 %v100_v49 }
 0x831   :  { %1282 = vmatprep.subr.mxu0 %v1439_v0 }
 0x832   :  { %1283 = vmatpush3.msra.mxu0 %v99_v50 }
 0x8eb   :  { %v779_v19 = vpop.f32.mrf.mxu0 }
 0x8ec   :  { %v780_v20 = vadd.f32 %v1145_v18, %v779_v19 }
 0x8ed   :  { %v1249_v21 = vpop.f32.mrf.mxu0 }
 0x8ee   :  { %v784_v22 = vadd.f32 %v780_v20, %v631_v9 }
 0x8f0   :  { %v786_v23 = vsel %vm785_vm8, %v784_v22, 0.0 }
 0x8f1   :  { %787 = vadd.xlane.f32.xlu1 %v786_v23 }
 0x97a   :  { %v788_v24 = vpop.xlane.xlu1 %787 }
 0x97b   :  { %v789_v25 = vmul.f32 0.0625, %v788_v24 }
 0x97d   :  { %v790_v26 = vsub.f32 %v784_v22, %v789_v25 }
 0x97f   :  { %v791_v27 = vmul.f32 %v790_v26, %v790_v26 }
 0x981   :  { %v792_v28 = vsel %vm785_vm8, %v791_v27, 0.0 }
 0x982   :  { %793 = vadd.xlane.f32.xlu1 %v792_v28 }
 0xa0b   :  { %v794_v31 = vpop.xlane.xlu1 %793 }
 0xa0c   :  { %v795_v32 = vmul.f32 0.0625, %v794_v31 }
 0xa0e   :  { %v796_v33 = vadd.f32 1e-05, %v795_v32 }
 0xa10   :  { %1323 = vrsqrt.f32 %v796_v33 }
 0xa1d   :  { %v1324_v34 = vpop.eup %1323 }
 0xa1e   :  { %v798_v36 = vmul.f32 %v1324_v34, %v790_v26 }
 0xa20   :  { %v803_v38 = vmul.f32 %v1147_v35, %v798_v36 }
 0xa22   :  { %v808_v39 = vadd.f32 %v1148_v37, %v803_v38 }
 0xa24   :  { %1255 = vmatmul.mubr.msk.f32.vlgmr.msra.gmra.mxu1 %vm122_vm2, %v808_v39 }
 0xa25   :  { %1258 = vmatpush3.msra.mxu1 %v96_v40  ;;  %1273 = vmatprep.mubr.msk.f32.mxu1 %vm1440_vm0, %v1439_v0 }
 0xa26   :  { %1259 = vmatprep.subr.mxu1 %v1439_v0 }
 0xa27   :  { %1260 = vmatpush3.msra.mxu1 %v95_v41 }
 0xa28   :  { %1261 = vmatprep.subr.mxu1 %v1439_v0 }
 0xa29   :  { %1262 = vmatpush3.msra.mxu1 %v94_v42 }
 0xa2a   :  { %1263 = vmatprep.subr.mxu1 %v1439_v0 }
 0xa2b   :  { %1264 = vmatpush3.msra.mxu1 %v93_v43 }
 0xa2c   :  { %1265 = vmatprep.subr.mxu1 %v1439_v0 }
 0xa2d   :  { %1266 = vmatpush3.msra.mxu1 %v92_v4 }
 0xa2e   :  { %1267 = vmatprep.subr.mxu1 %v1439_v0 }
 0xa2f   :  { %1268 = vmatpush3.msra.mxu1 %v91_v3 }
 0xa30   :  { %1269 = vmatprep.subr.mxu1 %v1439_v0 }
 0xa31   :  { %1270 = vmatpush3.msra.mxu1 %v90_v44 }
 0xa32   :  { %1271 = vmatprep.subr.mxu1 %v1439_v0 }
 0xa33   :  { %1272 = vmatpush3.msra.mxu1 %v89_v45 }
 0xa34   :  { %1274 = vmatmul.mubr.msk.f32.vlgmr.msra.gmra.mxu1 %vm709_vm7, %v809_v46  ;;  %1287 = vmatprep.subr.mxu1 %v1439_v0 }
 0xa35   :  { %1295 = vmatprep.mubr.msk.f32.mxu1 %vm1440_vm0, %v1439_v0  ;;  %1288 = vmatpush3.msra.mxu1 %v106_v51 }
 0xa36   :  { %1289 = vmatprep.subr.mxu1 %v1439_v0 }
 0xa37   :  { %1290 = vmatpush3.msra.mxu1 %v105_v60 }
 0xa38   :  { %1291 = vmatprep.subr.mxu1 %v1439_v0 }
 0xa39   :  { %1292 = vmatpush3.msra.mxu1 %v104_v61 }
 0xa3a   :  { %1293 = vmatprep.subr.mxu1 %v1439_v0 }
 0xa3b   :  { %1294 = vmatpush3.msra.mxu1 %v103_v62 }
 0xae4   :  { %v879_v52 = vpop.f32.mrf.mxu1 }
 0xae6   :  { %v1256_v53 = vpop.f32.mrf.mxu1 }
 0xaf4   :  { %v952_v55 = vpop.f32.mrf.mxu1 }
 0xaf5   :  { %v953_v56 = vadd.f32 %v952_v55, %v879_v52 }
 0xaf6   :  { %v1275_v57 = vpop.f32.mrf.mxu1 }
 0xaf7   :  { %v960_v58 = vadd.f32 %v1151_v54, %v953_v56 }
 0xaf9   :  { %v961_v59 = vmax.f32 %v960_v58, 0.0 }
 0xafb   :  { %1285 = vmatmul.mubr.msk.f32.vlgmr.msra.gmra.mxu0 %vm966_vm9, %v961_v59 }
 0xbbb   :  { %v1036_v1 = vpop.f32.mrf.mxu0 }
 0xbbc   :  { %v1037_v2 = vadd.f32 %v1152_v63, %v1036_v1 }
 0xbbd   :  { %v1286_v5 = vpop.f32.mrf.mxu0 }
 0xbbe   :  { %v1040_v6 = vmax.f32 %v1037_v2, 0.0 }
 0xbc0   :  { %1296 = vmatmul.mubr.msk.f32.vlgmr.msra.gmra.mxu1 %vm966_vm9, %v1040_v6 }
 0xc80   :  { %v1114_v8 = vpop.f32.mrf.mxu1 }
 0xc81   :  { %v1115_v9 = vadd.f32 %v1154_v7, %v1114_v8 }
 0xc82   :  { %v1297_v10 = vpop.f32.mrf.mxu1 }
 0xc83   :  { %1119 = vst.msk [vmem:[#allocation10] sm:$0x3] %vm1118_vm10, %v1115_v9 }
 0xc84   :  { %1416 = shalt.err (!%p1413_p10)
}
 0xc85   :  { %1129 = dma.vmem_to_hbm [thread:$0]  %s1127_s3, 32, %s1577_s4, [#allocation4]  }
 0xc86   :  { %1431 = dma.done.wait [#allocation4], 32  }
 0xc87   :  { %1432 = vsyncadd [#allocation4], 4294967264 }
 0xc88   :  { %1133 = vsyncpa [#allocation3], 1 }
 0xc89   :  { %1134 = vsyncpa [#allocation6], 1 }
 0xc8a   :  { %1135 = vsyncpa [#allocation9], 1 }
 0xc8b   :  { %1136 = vsyncpa [#allocation4], 1 }

</bundles_post_ra>
